<compile_context>
chip_gen: v5e
topology: v5e:2x2
jax: 0.10.0
libtpu: 0.0.40
codegen_flags: <defaults>
</compile_context>

<pallas_src>
import functools
import math

import jax
import jax.numpy as jnp
from jax import lax
from jax.experimental import pallas as pl
from jax.experimental.pallas import tpu as pltpu


# ------------------------------ helpers ------------------------------

def _layer_norm(v, g, b, eps):
    """f32 LayerNorm over the last axis (BERT eps=1e-12)."""
    mu = jnp.mean(v, axis=-1, keepdims=True)
    vc = v - mu
    var = jnp.mean(vc * vc, axis=-1, keepdims=True)
    return vc * lax.rsqrt(var + eps) * g + b


# --------------------------- Pallas kernels ---------------------------

def _encoder_layer_kernel(xq_ref, xf_ref, ln0g_ref, ln0b_ref,
                          wqkv_ref, bqkv_ref, wo_ref, bo_ref,
                          ln1g_ref, ln1b_ref, w1_ref, b1_ref,
                          w2_ref, b2_ref, ln2g_ref, ln2b_ref,
                          o_ref, ctx_sc, *, num_heads, eps, apply_input_ln):
    """One BERT encoder layer for one (batch, query-tile), VMEM-resident.

    xq_ref: (1, tq, H) bf16 query-tile rows (also the residual base)
    xf_ref: (1, S,  H) bf16 full sequence (source of K/V)
    Weights wqkv/wo/w1/w2 arrive pre-cast to bf16; biases & LN params are f32.
    """
    S = xf_ref.shape[-2]
    H = xf_ref.shape[-1]
    dh = H // num_heads
    scale = 1.0 / math.sqrt(dh)

    xq32 = xq_ref[0].astype(jnp.float32)                  # (tq, H)
    xf32 = xf_ref[0].astype(jnp.float32)                  # (S, H)
    if apply_input_ln:
        # Embedding LayerNorm fused as layer-0 prologue.
        xq32 = _layer_norm(xq32, ln0g_ref[...], ln0b_ref[...], eps)
        xf32 = _layer_norm(xf32, ln0g_ref[...], ln0b_ref[...], eps)

    xq_b = xq32.astype(jnp.bfloat16)
    xf_b = xf32.astype(jnp.bfloat16)

    wqkv = wqkv_ref[...]                                   # bf16 (H, 3H)
    bqkv = bqkv_ref[...]                                   # f32  (1, 3H)

    # --- fused QKV projection: Q from the query tile, K/V from the full seq ---
    q = jnp.dot(xq_b, wqkv[:, :H], preferred_element_type=jnp.float32) + bqkv[:, :H]
    kv = jnp.dot(xf_b, wqkv[:, H:], preferred_element_type=jnp.float32) + bqkv[:, H:]

    # casts hoisted out of the unrolled head loop
    q_b = q.astype(jnp.bfloat16)                           # (tq, H)
    kv_b = kv.astype(jnp.bfloat16)                         # (S, 2H)

    # --- per-head attention; ctx written into a (tq, H) VMEM scratch slab ---
    for h in range(num_heads):
        qh = q_b[:, h * dh:(h + 1) * dh]                   # (tq, dh)
        kh = kv_b[:, h * dh:(h + 1) * dh]                  # (S, dh)
        vh = kv_b[:, H + h * dh:H + (h + 1) * dh]          # (S, dh)
        s = lax.dot_general(qh, kh, (((1,), (1,)), ((), ())),
                            preferred_element_type=jnp.float32) * scale   # (tq, S)
        s = s - jnp.max(s, axis=-1, keepdims=True)
        p = jnp.exp(s)
        p = p * pl.reciprocal(jnp.sum(p, axis=-1, keepdims=True), approx=True)
        ctx_sc[:, h * dh:(h + 1) * dh] = jnp.dot(
            p.astype(jnp.bfloat16), vh, preferred_element_type=jnp.float32)

    # --- single full-depth (K=H) output projection ---
    attn = jnp.dot(ctx_sc[...].astype(jnp.bfloat16), wo_ref[...],
                   preferred_element_type=jnp.float32) + bo_ref[...]

    y1 = _layer_norm(attn + xq32, ln1g_ref[...], ln1b_ref[...], eps)

    # --- feed-forward with GELU (f32 epilogue math) ---
    h1 = jnp.dot(y1.astype(jnp.bfloat16), w1_ref[...],
                 preferred_element_type=jnp.float32) + b1_ref[...]
    # TODO(synk): HF BERT uses exact (erf) GELU; tanh approximation kept for
    # robust Mosaic lowering (difference ~1e-3).
    c = math.sqrt(2.0 / math.pi)
    h1 = 0.5 * h1 * (1.0 + jnp.tanh(c * (h1 + 0.044715 * h1 * h1 * h1)))
    h2 = jnp.dot(h1.astype(jnp.bfloat16), w2_ref[...],
                 preferred_element_type=jnp.float32) + b2_ref[...]

    o_ref[0] = _layer_norm(h2 + y1, ln2g_ref[...], ln2b_ref[...], eps).astype(o_ref.dtype)


def encoder_layer(x, lp, ln0, num_heads, eps=1e-12, tq=None):
    """x: (B, S, H) bf16 residual stream. ln0=(gamma, beta) fuses embed-LN prologue."""
    B, S, H = x.shape
    I = lp["w1"].shape[1]
    if tq is None:
        tq = S if S <= 128 else 128
    assert S % tq == 0, "TODO(synk): ragged last query tile not handled"
    nq = S // tq

    apply_input_ln = ln0 is not None
    if apply_input_ln:
        ln0g, ln0b = ln0
    else:
        # unused when the flag is off; reuse existing tiny arrays (no extra alloc)
        ln0g, ln0b = lp["ln1_g"], lp["ln1_b"]

    def full(shape):
        return pl.BlockSpec(shape, lambda b, q, n=len(shape): (0,) * n)

    flops = int(B * (2 * S * H * H                # Q projection
                     + nq * 2 * S * 2 * H * H     # K/V projection (per q tile)
                     + 4 * S * S * H              # scores + ctx
                     + 2 * S * H * H              # output projection
                     + 4 * S * H * I))            # FFN
    transcendentals = int(B * (num_heads * S * S  # softmax exp
                               + S * I            # GELU tanh
                               + 4 * S))          # LN rsqrt (incl. fused LN0)
    bytes_accessed = int(2 * B * (nq * S * H + 2 * S * H)          # bf16 activations
                         + 2 * (3 * H * H + H * H + 2 * H * I)     # bf16 weights
                         + 4 * (3 * H + I + 10 * H))               # f32 biases/LN

    return pl.pallas_call(
        functools.partial(_encoder_layer_kernel, num_heads=num_heads, eps=eps,
                          apply_input_ln=apply_input_ln),
        out_shape=jax.ShapeDtypeStruct((B, S, H), jnp.bfloat16),
        grid=(B, nq),
        in_specs=[
            pl.BlockSpec((1, tq, H), lambda b, q: (b, q, 0)),   # x query tile
            pl.BlockSpec((1, S, H), lambda b, q: (b, 0, 0)),    # x full seq (K/V)
            full((1, H)), full((1, H)),                         # ln0 gamma/beta
            full((H, 3 * H)), full((1, 3 * H)),                 # wqkv (bf16), bqkv
            full((H, H)), full((1, H)),                         # wo (bf16), bo
            full((1, H)), full((1, H)),                         # ln1 gamma/beta
            full((H, I)), full((1, I)),                         # w1 (bf16), b1
            full((I, H)), full((1, H)),                         # w2 (bf16), b2
            full((1, H)), full((1, H)),                         # ln2 gamma/beta
        ],
        out_specs=pl.BlockSpec((1, tq, H), lambda b, q: (b, q, 0)),
        scratch_shapes=[pltpu.VMEM((tq, H), jnp.float32)],       # per-head ctx slab
        compiler_params=pltpu.CompilerParams(
            dimension_semantics=("parallel", "parallel")),
        cost_estimate=pl.CostEstimate(flops=flops, transcendentals=transcendentals,
                                      bytes_accessed=bytes_accessed),
    )(x, x, ln0g.reshape(1, H), ln0b.reshape(1, H),
      lp["wqkv"], lp["bqkv"].reshape(1, 3 * H), lp["wo"], lp["bo"].reshape(1, H),
      lp["ln1_g"].reshape(1, H), lp["ln1_b"].reshape(1, H),
      lp["w1"], lp["b1"].reshape(1, I), lp["w2"], lp["b2"].reshape(1, H),
      lp["ln2_g"].reshape(1, H), lp["ln2_b"].reshape(1, H))


def _span_heads_loss_kernel(x_ref, w_ref, b_ref, oh_ref, logits_ref, loss_ref,
                            *, n_rows, n_cls):
    """Combined start|end logits (one matmul, one output slab) + summed mean-CE."""
    x = x_ref[...].astype(jnp.float32)                       # (M, H)
    lg = jnp.dot(x, w_ref[...], preferred_element_type=jnp.float32) + b_ref[...]
    logits_ref[...] = lg                                     # (M, 2C) single store

    oh = oh_ref[...]

    def ce(l, o):
        m = jnp.max(l, axis=-1, keepdims=True)
        lse = m + jnp.log(jnp.sum(jnp.exp(l - m), axis=-1, keepdims=True))
        nll = lse - jnp.sum(l * o, axis=-1, keepdims=True)              # (M, 1)
        return jnp.sum(nll, axis=0, keepdims=True) * (1.0 / n_rows)     # (1, 1)

    loss_ref[...] = (ce(lg[:, :n_cls], oh[:, :n_cls])
                     + ce(lg[:, n_cls:], oh[:, n_cls:]))


def span_heads_and_loss(x2d, ws, bs, we, be, soh, eoh):
    M, H = x2d.shape
    C = ws.shape[1]
    w_cat = jnp.concatenate([ws, we], axis=1)                 # (H, 2C)
    b_cat = jnp.concatenate([bs, be], axis=0).reshape(1, 2 * C)
    oh_cat = jnp.concatenate([soh, eoh], axis=1)              # (M, 2C)

    def full(shape):
        return pl.BlockSpec(shape, lambda i, n=len(shape): (0,) * n)

    # TODO(synk): for real B*S, add a row-tile grid axis over M with the loss as
    # an "arbitrary"-axis accumulator; at M=16 a single block is optimal.
    logits, loss = pl.pallas_call(
        functools.partial(_span_heads_loss_kernel, n_rows=float(M), n_cls=C),
        out_shape=(jax.ShapeDtypeStruct((M, 2 * C), jnp.float32),
                   jax.ShapeDtypeStruct((1, 1), jnp.float32)),
        grid=(1,),
        in_specs=[full((M, H)), full((H, 2 * C)), full((1, 2 * C)), full((M, 2 * C))],
        out_specs=(full((M, 2 * C)), full((1, 1))),
    )(x2d, w_cat, b_cat, oh_cat)
    return logits[:, :C], logits[:, C:], loss[0, 0]


# ----------------------------- model (glue) -----------------------------

class Config:
    vocab_size = 100
    hidden_size = 32
    num_layers = 2
    num_heads = 2
    intermediate_size = 64
    max_position = 64
    type_vocab_size = 2
    seq_len = 8
    batch = 2


def init_params(key, cfg):
    H, I = cfg.hidden_size, cfg.intermediate_size
    keys = jax.random.split(key, 5 + 6 * cfg.num_layers)
    ki = iter(keys)

    def w(shape, scale=0.02):
        return (scale * jax.random.normal(next(ki), shape)).astype(jnp.float32)

    params = {
        "word_emb": w((cfg.vocab_size, H)),
        "pos_emb": w((cfg.max_position, H)),
        "type_emb": w((cfg.type_vocab_size, H)),
        "emb_ln_g": jnp.ones((H,), jnp.float32),
        "emb_ln_b": jnp.zeros((H,), jnp.float32),
        "w_start": w((H, 2)), "b_start": jnp.zeros((2,), jnp.float32),
        "w_end": w((H, 2)), "b_end": jnp.zeros((2,), jnp.float32),
        "layers": [],
    }
    for _ in range(cfg.num_layers):
        wq, wk, wv = w((H, H)), w((H, H)), w((H, H))
        params["layers"].append({
            # matmul weights stored & DMA'd in bf16; biases / LN params stay f32
            "wqkv": jnp.concatenate([wq, wk, wv], axis=1).astype(jnp.bfloat16),
            "bqkv": jnp.zeros((3 * H,), jnp.float32),
            "wo": w((H, H)).astype(jnp.bfloat16), "bo": jnp.zeros((H,), jnp.float32),
            "ln1_g": jnp.ones((H,), jnp.float32), "ln1_b": jnp.zeros((H,), jnp.float32),
            "w1": w((H, I)).astype(jnp.bfloat16), "b1": jnp.zeros((I,), jnp.float32),
            "w2": w((I, H)).astype(jnp.bfloat16), "b2": jnp.zeros((H,), jnp.float32),
            "ln2_g": jnp.ones((H,), jnp.float32), "ln2_b": jnp.zeros((H,), jnp.float32),
        })
    return params


def bert_re_forward(params, cfg, input_ids, attention_mask, token_type_ids,
                    start_labels=None, end_labels=None):
    # Matches reference: bert is called with input_ids only (mask unused,
    # token_type_ids default to zeros inside BertModel).
    del attention_mask, token_type_ids
    B, S = input_ids.shape
    H = cfg.hidden_size

    # --- embeddings: gathers stay in JAX/XLA (no clean rectangular BlockSpec).
    #     The embedding LayerNorm is fused into the first encoder-layer kernel. ---
    pos_ids = jnp.arange(S, dtype=jnp.int32)
    tok_type = jnp.zeros((B, S), jnp.int32)
    emb = (params["word_emb"][input_ids]
           + params["pos_emb"][pos_ids][None, :, :]
           + params["type_emb"][tok_type]).astype(jnp.float32)
    # residual stream travels in bf16 between kernels; LN math is f32 in-kernel
    x = emb.astype(jnp.bfloat16)

    assert len(params["layers"]) >= 1
    for li, lp in enumerate(params["layers"]):
        ln0 = (params["emb_ln_g"], params["emb_ln_b"]) if li == 0 else None
        x = encoder_layer(x, lp, ln0, cfg.num_heads)

    seq_out = x.reshape(B * S, H)   # == bert_output[0] flattened (bf16)

    # --- span heads + loss (single fused kernel, one combined matmul) ---
    if start_labels is not None:
        soh = jax.nn.one_hot(start_labels.reshape(-1), 2, dtype=jnp.float32)
        eoh = jax.nn.one_hot(end_labels.reshape(-1), 2, dtype=jnp.float32)
    else:
        # zero one-hots -> loss output is discarded below (reference returns None).
        soh = jnp.zeros((B * S, 2), jnp.float32)
        eoh = jnp.zeros((B * S, 2), jnp.float32)

    sl2, el2, loss = span_heads_and_loss(seq_out,
                                         params["w_start"], params["b_start"],
                                         params["w_end"], params["b_end"],
                                         soh, eoh)
    start_logits = sl2.reshape(B, S, 2)
    end_logits = el2.reshape(B, S, 2)
    if start_labels is None:
        loss = None

    return {
        "start_logits": start_logits,
        "end_logits": end_logits,
        "start_labels": start_labels,
        "end_labels": end_labels,
        "loss": loss,
    }


# --------------------------------- main ---------------------------------

if __name__ == "__main__":
    cfg = Config()
    key = jax.random.PRNGKey(0)
    pkey, ikey, skey, ekey = jax.random.split(key, 4)

    params = init_params(pkey, cfg)
    input_ids = jax.random.randint(ikey, (cfg.batch, cfg.seq_len), 0, cfg.vocab_size,
                                   dtype=jnp.int32)
    attention_mask = jnp.ones((cfg.batch, cfg.seq_len), jnp.int32)
    token_type_ids = jnp.zeros((cfg.batch, cfg.seq_len), jnp.int32)
    start_labels = jax.random.randint(skey, (cfg.batch, cfg.seq_len), 0, 2, dtype=jnp.int32)
    end_labels = jax.random.randint(ekey, (cfg.batch, cfg.seq_len), 0, 2, dtype=jnp.int32)

    out = bert_re_forward(params, cfg, input_ids, attention_mask, token_type_ids,
                          start_labels, end_labels)
    jax.block_until_ready((out["start_logits"], out["end_logits"], out["loss"]))
    print("KERNEL_OK")
</pallas_src>

<mosaic_0001>
module attributes {stable_mosaic.version = 11 : i64} {
  func.func @_encoder_layer_kernel(%arg0: i32, %arg1: i32, %arg2: memref<1x8x32xbf16, #tpu.memory_space<vmem>>, %arg3: memref<1x8x32xbf16, #tpu.memory_space<vmem>>, %arg4: memref<1x32xf32, #tpu.memory_space<vmem>>, %arg5: memref<1x32xf32, #tpu.memory_space<vmem>>, %arg6: memref<32x96xbf16, #tpu.memory_space<vmem>>, %arg7: memref<1x96xf32, #tpu.memory_space<vmem>>, %arg8: memref<32x32xbf16, #tpu.memory_space<vmem>>, %arg9: memref<1x32xf32, #tpu.memory_space<vmem>>, %arg10: memref<1x32xf32, #tpu.memory_space<vmem>>, %arg11: memref<1x32xf32, #tpu.memory_space<vmem>>, %arg12: memref<32x64xbf16, #tpu.memory_space<vmem>>, %arg13: memref<1x64xf32, #tpu.memory_space<vmem>>, %arg14: memref<64x32xbf16, #tpu.memory_space<vmem>>, %arg15: memref<1x32xf32, #tpu.memory_space<vmem>>, %arg16: memref<1x32xf32, #tpu.memory_space<vmem>>, %arg17: memref<1x32xf32, #tpu.memory_space<vmem>>, %arg18: memref<1x8x32xbf16, #tpu.memory_space<vmem>>, %arg19: memref<8x32xf32, #tpu.memory_space<vmem>>) attributes {dimension_semantics = [#tpu.dimension_semantics<parallel>, #tpu.dimension_semantics<parallel>], iteration_bounds = array<i64: 2, 1>, scalar_prefetch = 0 : i64, scratch_operands = 1 : i64, tpu.core_type = #tpu.core_type<tc>, window_params = [{transform_indices = @transform_0, window_bounds = array<i64: 1, 8, 32>}, {transform_indices = @transform_1, window_bounds = array<i64: 1, 8, 32>}, {pipeline_mode = #tpu.pipeline_mode<synchronous>, transform_indices = @transform_2, window_bounds = array<i64: 1, 32>}, {pipeline_mode = #tpu.pipeline_mode<synchronous>, transform_indices = @transform_3, window_bounds = array<i64: 1, 32>}, {pipeline_mode = #tpu.pipeline_mode<synchronous>, transform_indices = @transform_4, window_bounds = array<i64: 32, 96>}, {pipeline_mode = #tpu.pipeline_mode<synchronous>, transform_indices = @transform_5, window_bounds = array<i64: 1, 96>}, {pipeline_mode = #tpu.pipeline_mode<synchronous>, transform_indices = @transform_6, window_bounds = array<i64: 32, 32>}, {pipeline_mode = #tpu.pipeline_mode<synchronous>, transform_indices = @transform_7, window_bounds = array<i64: 1, 32>}, {pipeline_mode = #tpu.pipeline_mode<synchronous>, transform_indices = @transform_8, window_bounds = array<i64: 1, 32>}, {pipeline_mode = #tpu.pipeline_mode<synchronous>, transform_indices = @transform_9, window_bounds = array<i64: 1, 32>}, {pipeline_mode = #tpu.pipeline_mode<synchronous>, transform_indices = @transform_10, window_bounds = array<i64: 32, 64>}, {pipeline_mode = #tpu.pipeline_mode<synchronous>, transform_indices = @transform_11, window_bounds = array<i64: 1, 64>}, {pipeline_mode = #tpu.pipeline_mode<synchronous>, transform_indices = @transform_12, window_bounds = array<i64: 64, 32>}, {pipeline_mode = #tpu.pipeline_mode<synchronous>, transform_indices = @transform_13, window_bounds = array<i64: 1, 32>}, {pipeline_mode = #tpu.pipeline_mode<synchronous>, transform_indices = @transform_14, window_bounds = array<i64: 1, 32>}, {pipeline_mode = #tpu.pipeline_mode<synchronous>, transform_indices = @transform_15, window_bounds = array<i64: 1, 32>}, {transform_indices = @transform_16, window_bounds = array<i64: 1, 8, 32>}]} {
    %c0 = arith.constant 0 : index
    %c0_0 = arith.constant 0 : index
    %c0_1 = arith.constant 0 : index
    %0 = vector.load %arg2[%c0, %c0_0, %c0_1] : memref<1x8x32xbf16, #tpu.memory_space<vmem>>, vector<1x8x32xbf16>
    %1 = vector.shape_cast %0 : vector<1x8x32xbf16> to vector<8x32xbf16>
    %2 = arith.extf %1 : vector<8x32xbf16> to vector<8x32xf32>
    %c0_2 = arith.constant 0 : index
    %c0_3 = arith.constant 0 : index
    %c0_4 = arith.constant 0 : index
    %3 = vector.load %arg3[%c0_2, %c0_3, %c0_4] : memref<1x8x32xbf16, #tpu.memory_space<vmem>>, vector<1x8x32xbf16>
    %4 = vector.shape_cast %3 : vector<1x8x32xbf16> to vector<8x32xbf16>
    %5 = arith.extf %4 : vector<8x32xbf16> to vector<8x32xf32>
    %c0_5 = arith.constant 0 : index
    %c0_6 = arith.constant 0 : index
    %6 = vector.load %arg4[%c0_5, %c0_6] : memref<1x32xf32, #tpu.memory_space<vmem>>, vector<1x32xf32>
    %c0_7 = arith.constant 0 : index
    %c0_8 = arith.constant 0 : index
    %7 = vector.load %arg5[%c0_7, %c0_8] : memref<1x32xf32, #tpu.memory_space<vmem>>, vector<1x32xf32>
    %cst = arith.constant dense<0.000000e+00> : vector<8xf32>
    %8 = vector.multi_reduction <add>, %2, %cst [1] : vector<8x32xf32> to vector<8xf32>
    %9 = vector.shape_cast %8 : vector<8xf32> to vector<8x1xf32>
    %cst_9 = arith.constant 3.200000e+01 : f32
    %10 = vector.broadcast %cst_9 : f32 to vector<8x1xf32>
    %11 = arith.divf %9, %10 : vector<8x1xf32>
    %12 = vector.broadcast %11 : vector<8x1xf32> to vector<8x32xf32>
    %13 = arith.subf %2, %12 : vector<8x32xf32>
    %14 = arith.mulf %13, %13 : vector<8x32xf32>
    %cst_10 = arith.constant dense<0.000000e+00> : vector<8xf32>
    %15 = vector.multi_reduction <add>, %14, %cst_10 [1] : vector<8x32xf32> to vector<8xf32>
    %16 = vector.shape_cast %15 : vector<8xf32> to vector<8x1xf32>
    %cst_11 = arith.constant 3.200000e+01 : f32
    %17 = vector.broadcast %cst_11 : f32 to vector<8x1xf32>
    %18 = arith.divf %16, %17 : vector<8x1xf32>
    %cst_12 = arith.constant 9.99999996E-13 : f32
    %19 = vector.broadcast %cst_12 : f32 to vector<8x1xf32>
    %20 = arith.addf %18, %19 : vector<8x1xf32>
    %21 = math.rsqrt %20 : vector<8x1xf32>
    %22 = vector.broadcast %21 : vector<8x1xf32> to vector<8x32xf32>
    %23 = arith.mulf %13, %22 : vector<8x32xf32>
    %24 = vector.broadcast %6 : vector<1x32xf32> to vector<8x32xf32>
    %25 = arith.mulf %23, %24 : vector<8x32xf32>
    %26 = vector.broadcast %7 : vector<1x32xf32> to vector<8x32xf32>
    %27 = arith.addf %25, %26 : vector<8x32xf32>
    %c0_13 = arith.constant 0 : index
    %c0_14 = arith.constant 0 : index
    %28 = vector.load %arg4[%c0_13, %c0_14] : memref<1x32xf32, #tpu.memory_space<vmem>>, vector<1x32xf32>
    %c0_15 = arith.constant 0 : index
    %c0_16 = arith.constant 0 : index
    %29 = vector.load %arg5[%c0_15, %c0_16] : memref<1x32xf32, #tpu.memory_space<vmem>>, vector<1x32xf32>
    %cst_17 = arith.constant dense<0.000000e+00> : vector<8xf32>
    %30 = vector.multi_reduction <add>, %5, %cst_17 [1] : vector<8x32xf32> to vector<8xf32>
    %31 = vector.shape_cast %30 : vector<8xf32> to vector<8x1xf32>
    %cst_18 = arith.constant 3.200000e+01 : f32
    %32 = vector.broadcast %cst_18 : f32 to vector<8x1xf32>
    %33 = arith.divf %31, %32 : vector<8x1xf32>
    %34 = vector.broadcast %33 : vector<8x1xf32> to vector<8x32xf32>
    %35 = arith.subf %5, %34 : vector<8x32xf32>
    %36 = arith.mulf %35, %35 : vector<8x32xf32>
    %cst_19 = arith.constant dense<0.000000e+00> : vector<8xf32>
    %37 = vector.multi_reduction <add>, %36, %cst_19 [1] : vector<8x32xf32> to vector<8xf32>
    %38 = vector.shape_cast %37 : vector<8xf32> to vector<8x1xf32>
    %cst_20 = arith.constant 3.200000e+01 : f32
    %39 = vector.broadcast %cst_20 : f32 to vector<8x1xf32>
    %40 = arith.divf %38, %39 : vector<8x1xf32>
    %cst_21 = arith.constant 9.99999996E-13 : f32
    %41 = vector.broadcast %cst_21 : f32 to vector<8x1xf32>
    %42 = arith.addf %40, %41 : vector<8x1xf32>
    %43 = math.rsqrt %42 : vector<8x1xf32>
    %44 = vector.broadcast %43 : vector<8x1xf32> to vector<8x32xf32>
    %45 = arith.mulf %35, %44 : vector<8x32xf32>
    %46 = vector.broadcast %28 : vector<1x32xf32> to vector<8x32xf32>
    %47 = arith.mulf %45, %46 : vector<8x32xf32>
    %48 = vector.broadcast %29 : vector<1x32xf32> to vector<8x32xf32>
    %49 = arith.addf %47, %48 : vector<8x32xf32>
    %50 = arith.truncf %27 : vector<8x32xf32> to vector<8x32xbf16>
    %51 = arith.truncf %49 : vector<8x32xf32> to vector<8x32xbf16>
    %c0_22 = arith.constant 0 : index
    %c0_23 = arith.constant 0 : index
    %52 = vector.load %arg6[%c0_22, %c0_23] : memref<32x96xbf16, #tpu.memory_space<vmem>>, vector<32x96xbf16>
    %c0_24 = arith.constant 0 : index
    %c0_25 = arith.constant 0 : index
    %53 = vector.load %arg7[%c0_24, %c0_25] : memref<1x96xf32, #tpu.memory_space<vmem>>, vector<1x96xf32>
    %54 = vector.extract_strided_slice %52 {offsets = [0, 0], sizes = [32, 32], strides = [1, 1]} : vector<32x96xbf16> to vector<32x32xbf16>
    %cst_26 = arith.constant dense<0.000000e+00> : vector<8x32xf32>
    %55 = tpu.matmul %50, %54, %cst_26 {dimension_numbers = #tpu.dot_dimension_numbers<[1], [0], [0], [1], [0, 0, 1, 1], [], []>} : vector<8x32xbf16>, vector<32x32xbf16>, vector<8x32xf32> -> vector<8x32xf32>
    %56 = vector.extract_strided_slice %53 {offsets = [0, 0], sizes = [1, 32], strides = [1, 1]} : vector<1x96xf32> to vector<1x32xf32>
    %57 = vector.broadcast %56 : vector<1x32xf32> to vector<8x32xf32>
    %58 = arith.addf %55, %57 : vector<8x32xf32>
    %59 = vector.extract_strided_slice %52 {offsets = [0, 32], sizes = [32, 64], strides = [1, 1]} : vector<32x96xbf16> to vector<32x64xbf16>
    %cst_27 = arith.constant dense<0.000000e+00> : vector<8x64xf32>
    %60 = tpu.matmul %51, %59, %cst_27 {dimension_numbers = #tpu.dot_dimension_numbers<[1], [0], [0], [1], [0, 0, 1, 1], [], []>} : vector<8x32xbf16>, vector<32x64xbf16>, vector<8x64xf32> -> vector<8x64xf32>
    %61 = vector.extract_strided_slice %53 {offsets = [0, 32], sizes = [1, 64], strides = [1, 1]} : vector<1x96xf32> to vector<1x64xf32>
    %62 = vector.broadcast %61 : vector<1x64xf32> to vector<8x64xf32>
    %63 = arith.addf %60, %62 : vector<8x64xf32>
    %64 = arith.truncf %58 : vector<8x32xf32> to vector<8x32xbf16>
    %65 = arith.truncf %63 : vector<8x64xf32> to vector<8x64xbf16>
    %66 = vector.extract_strided_slice %64 {offsets = [0, 0], sizes = [8, 16], strides = [1, 1]} : vector<8x32xbf16> to vector<8x16xbf16>
    %67 = vector.extract_strided_slice %65 {offsets = [0, 0], sizes = [8, 16], strides = [1, 1]} : vector<8x64xbf16> to vector<8x16xbf16>
    %68 = vector.extract_strided_slice %65 {offsets = [0, 32], sizes = [8, 16], strides = [1, 1]} : vector<8x64xbf16> to vector<8x16xbf16>
    %cst_28 = arith.constant dense<0.000000e+00> : vector<8x8xf32>
    %69 = tpu.matmul %66, %67, %cst_28 {dimension_numbers = #tpu.dot_dimension_numbers<[1], [1], [0], [0], [0, 0, 1, 0], [], []>} : vector<8x16xbf16>, vector<8x16xbf16>, vector<8x8xf32> -> vector<8x8xf32>
    %cst_29 = arith.constant 2.500000e-01 : f32
    %70 = vector.broadcast %cst_29 : f32 to vector<8x8xf32>
    %71 = arith.mulf %69, %70 : vector<8x8xf32>
    %cst_30 = arith.constant dense<0xFF800000> : vector<8xf32>
    %72 = vector.multi_reduction <maximumf>, %71, %cst_30 [1] : vector<8x8xf32> to vector<8xf32>
    %73 = vector.shape_cast %72 : vector<8xf32> to vector<8x1xf32>
    %74 = vector.broadcast %73 : vector<8x1xf32> to vector<8x8xf32>
    %75 = arith.subf %71, %74 : vector<8x8xf32>
    %76 = math.exp %75 : vector<8x8xf32>
    %cst_31 = arith.constant dense<0.000000e+00> : vector<8xf32>
    %77 = vector.multi_reduction <add>, %76, %cst_31 [1] : vector<8x8xf32> to vector<8xf32>
    %78 = vector.shape_cast %77 : vector<8xf32> to vector<8x1xf32>
    %79 = tpu.reciprocal %78 {approx = true} : vector<8x1xf32> -> vector<8x1xf32>
    %80 = vector.broadcast %79 : vector<8x1xf32> to vector<8x8xf32>
    %81 = arith.mulf %76, %80 : vector<8x8xf32>
    %82 = arith.truncf %81 : vector<8x8xf32> to vector<8x8xbf16>
    %cst_32 = arith.constant dense<0.000000e+00> : vector<8x16xf32>
    %83 = tpu.matmul %82, %68, %cst_32 {dimension_numbers = #tpu.dot_dimension_numbers<[1], [0], [0], [1], [0, 0, 1, 1], [], []>} : vector<8x8xbf16>, vector<8x16xbf16>, vector<8x16xf32> -> vector<8x16xf32>
    %c0_33 = arith.constant 0 : index
    %c0_34 = arith.constant 0 : index
    %84 = vector.load %arg19[%c0_33, %c0_34] : memref<8x32xf32, #tpu.memory_space<vmem>>, vector<8x16xf32>
    tpu.vector_store %arg19[%c0_33, %c0_34], %83 {strides = array<i32>} : memref<8x32xf32, #tpu.memory_space<vmem>>, vector<8x16xf32>,
    %85 = vector.extract_strided_slice %64 {offsets = [0, 16], sizes = [8, 16], strides = [1, 1]} : vector<8x32xbf16> to vector<8x16xbf16>
    %86 = vector.extract_strided_slice %65 {offsets = [0, 16], sizes = [8, 16], strides = [1, 1]} : vector<8x64xbf16> to vector<8x16xbf16>
    %87 = vector.extract_strided_slice %65 {offsets = [0, 48], sizes = [8, 16], strides = [1, 1]} : vector<8x64xbf16> to vector<8x16xbf16>
    %cst_35 = arith.constant dense<0.000000e+00> : vector<8x8xf32>
    %88 = tpu.matmul %85, %86, %cst_35 {dimension_numbers = #tpu.dot_dimension_numbers<[1], [1], [0], [0], [0, 0, 1, 0], [], []>} : vector<8x16xbf16>, vector<8x16xbf16>, vector<8x8xf32> -> vector<8x8xf32>
    %cst_36 = arith.constant 2.500000e-01 : f32
    %89 = vector.broadcast %cst_36 : f32 to vector<8x8xf32>
    %90 = arith.mulf %88, %89 : vector<8x8xf32>
    %cst_37 = arith.constant dense<0xFF800000> : vector<8xf32>
    %91 = vector.multi_reduction <maximumf>, %90, %cst_37 [1] : vector<8x8xf32> to vector<8xf32>
    %92 = vector.shape_cast %91 : vector<8xf32> to vector<8x1xf32>
    %93 = vector.broadcast %92 : vector<8x1xf32> to vector<8x8xf32>
    %94 = arith.subf %90, %93 : vector<8x8xf32>
    %95 = math.exp %94 : vector<8x8xf32>
    %cst_38 = arith.constant dense<0.000000e+00> : vector<8xf32>
    %96 = vector.multi_reduction <add>, %95, %cst_38 [1] : vector<8x8xf32> to vector<8xf32>
    %97 = vector.shape_cast %96 : vector<8xf32> to vector<8x1xf32>
    %98 = tpu.reciprocal %97 {approx = true} : vector<8x1xf32> -> vector<8x1xf32>
    %99 = vector.broadcast %98 : vector<8x1xf32> to vector<8x8xf32>
    %100 = arith.mulf %95, %99 : vector<8x8xf32>
    %101 = arith.truncf %100 : vector<8x8xf32> to vector<8x8xbf16>
    %cst_39 = arith.constant dense<0.000000e+00> : vector<8x16xf32>
    %102 = tpu.matmul %101, %87, %cst_39 {dimension_numbers = #tpu.dot_dimension_numbers<[1], [0], [0], [1], [0, 0, 1, 1], [], []>} : vector<8x8xbf16>, vector<8x16xbf16>, vector<8x16xf32> -> vector<8x16xf32>
    %c0_40 = arith.constant 0 : index
    %c16 = arith.constant 16 : index
    %103 = vector.load %arg19[%c0_40, %c16] : memref<8x32xf32, #tpu.memory_space<vmem>>, vector<8x16xf32>
    tpu.vector_store %arg19[%c0_40, %c16], %102 {strides = array<i32>} : memref<8x32xf32, #tpu.memory_space<vmem>>, vector<8x16xf32>,
    %c0_41 = arith.constant 0 : index
    %c0_42 = arith.constant 0 : index
    %104 = vector.load %arg19[%c0_41, %c0_42] : memref<8x32xf32, #tpu.memory_space<vmem>>, vector<8x32xf32>
    %105 = arith.truncf %104 : vector<8x32xf32> to vector<8x32xbf16>
    %c0_43 = arith.constant 0 : index
    %c0_44 = arith.constant 0 : index
    %106 = vector.load %arg8[%c0_43, %c0_44] : memref<32x32xbf16, #tpu.memory_space<vmem>>, vector<32x32xbf16>
    %cst_45 = arith.constant dense<0.000000e+00> : vector<8x32xf32>
    %107 = tpu.matmul %105, %106, %cst_45 {dimension_numbers = #tpu.dot_dimension_numbers<[1], [0], [0], [1], [0, 0, 1, 1], [], []>} : vector<8x32xbf16>, vector<32x32xbf16>, vector<8x32xf32> -> vector<8x32xf32>
    %c0_46 = arith.constant 0 : index
    %c0_47 = arith.constant 0 : index
    %108 = vector.load %arg9[%c0_46, %c0_47] : memref<1x32xf32, #tpu.memory_space<vmem>>, vector<1x32xf32>
    %109 = vector.broadcast %108 : vector<1x32xf32> to vector<8x32xf32>
    %110 = arith.addf %107, %109 : vector<8x32xf32>
    %111 = arith.addf %110, %27 : vector<8x32xf32>
    %c0_48 = arith.constant 0 : index
    %c0_49 = arith.constant 0 : index
    %112 = vector.load %arg10[%c0_48, %c0_49] : memref<1x32xf32, #tpu.memory_space<vmem>>, vector<1x32xf32>
    %c0_50 = arith.constant 0 : index
    %c0_51 = arith.constant 0 : index
    %113 = vector.load %arg11[%c0_50, %c0_51] : memref<1x32xf32, #tpu.memory_space<vmem>>, vector<1x32xf32>
    %cst_52 = arith.constant dense<0.000000e+00> : vector<8xf32>
    %114 = vector.multi_reduction <add>, %111, %cst_52 [1] : vector<8x32xf32> to vector<8xf32>
    %115 = vector.shape_cast %114 : vector<8xf32> to vector<8x1xf32>
    %cst_53 = arith.constant 3.200000e+01 : f32
    %116 = vector.broadcast %cst_53 : f32 to vector<8x1xf32>
    %117 = arith.divf %115, %116 : vector<8x1xf32>
    %118 = vector.broadcast %117 : vector<8x1xf32> to vector<8x32xf32>
    %119 = arith.subf %111, %118 : vector<8x32xf32>
    %120 = arith.mulf %119, %119 : vector<8x32xf32>
    %cst_54 = arith.constant dense<0.000000e+00> : vector<8xf32>
    %121 = vector.multi_reduction <add>, %120, %cst_54 [1] : vector<8x32xf32> to vector<8xf32>
    %122 = vector.shape_cast %121 : vector<8xf32> to vector<8x1xf32>
    %cst_55 = arith.constant 3.200000e+01 : f32
    %123 = vector.broadcast %cst_55 : f32 to vector<8x1xf32>
    %124 = arith.divf %122, %123 : vector<8x1xf32>
    %cst_56 = arith.constant 9.99999996E-13 : f32
    %125 = vector.broadcast %cst_56 : f32 to vector<8x1xf32>
    %126 = arith.addf %124, %125 : vector<8x1xf32>
    %127 = math.rsqrt %126 : vector<8x1xf32>
    %128 = vector.broadcast %127 : vector<8x1xf32> to vector<8x32xf32>
    %129 = arith.mulf %119, %128 : vector<8x32xf32>
    %130 = vector.broadcast %112 : vector<1x32xf32> to vector<8x32xf32>
    %131 = arith.mulf %129, %130 : vector<8x32xf32>
    %132 = vector.broadcast %113 : vector<1x32xf32> to vector<8x32xf32>
    %133 = arith.addf %131, %132 : vector<8x32xf32>
    %134 = arith.truncf %133 : vector<8x32xf32> to vector<8x32xbf16>
    %c0_57 = arith.constant 0 : index
    %c0_58 = arith.constant 0 : index
    %135 = vector.load %arg12[%c0_57, %c0_58] : memref<32x64xbf16, #tpu.memory_space<vmem>>, vector<32x64xbf16>
    %cst_59 = arith.constant dense<0.000000e+00> : vector<8x64xf32>
    %136 = tpu.matmul %134, %135, %cst_59 {dimension_numbers = #tpu.dot_dimension_numbers<[1], [0], [0], [1], [0, 0, 1, 1], [], []>} : vector<8x32xbf16>, vector<32x64xbf16>, vector<8x64xf32> -> vector<8x64xf32>
    %c0_60 = arith.constant 0 : index
    %c0_61 = arith.constant 0 : index
    %137 = vector.load %arg13[%c0_60, %c0_61] : memref<1x64xf32, #tpu.memory_space<vmem>>, vector<1x64xf32>
    %138 = vector.broadcast %137 : vector<1x64xf32> to vector<8x64xf32>
    %139 = arith.addf %136, %138 : vector<8x64xf32>
    %cst_62 = arith.constant 5.000000e-01 : f32
    %140 = vector.broadcast %cst_62 : f32 to vector<8x64xf32>
    %141 = arith.mulf %140, %139 : vector<8x64xf32>
    %cst_63 = arith.constant 4.471500e-02 : f32
    %142 = vector.broadcast %cst_63 : f32 to vector<8x64xf32>
    %143 = arith.mulf %142, %139 : vector<8x64xf32>
    %144 = arith.mulf %143, %139 : vector<8x64xf32>
    %145 = arith.mulf %144, %139 : vector<8x64xf32>
    %146 = arith.addf %139, %145 : vector<8x64xf32>
    %cst_64 = arith.constant 0.797884583 : f32
    %147 = vector.broadcast %cst_64 : f32 to vector<8x64xf32>
    %148 = arith.mulf %147, %146 : vector<8x64xf32>
    %149 = math.tanh %148 : vector<8x64xf32>
    %cst_65 = arith.constant 1.000000e+00 : f32
    %150 = vector.broadcast %cst_65 : f32 to vector<8x64xf32>
    %151 = arith.addf %150, %149 : vector<8x64xf32>
    %152 = arith.mulf %141, %151 : vector<8x64xf32>
    %153 = arith.truncf %152 : vector<8x64xf32> to vector<8x64xbf16>
    %c0_66 = arith.constant 0 : index
    %c0_67 = arith.constant 0 : index
    %154 = vector.load %arg14[%c0_66, %c0_67] : memref<64x32xbf16, #tpu.memory_space<vmem>>, vector<64x32xbf16>
    %cst_68 = arith.constant dense<0.000000e+00> : vector<8x32xf32>
    %155 = tpu.matmul %153, %154, %cst_68 {dimension_numbers = #tpu.dot_dimension_numbers<[1], [0], [0], [1], [0, 0, 1, 1], [], []>} : vector<8x64xbf16>, vector<64x32xbf16>, vector<8x32xf32> -> vector<8x32xf32>
    %c0_69 = arith.constant 0 : index
    %c0_70 = arith.constant 0 : index
    %156 = vector.load %arg15[%c0_69, %c0_70] : memref<1x32xf32, #tpu.memory_space<vmem>>, vector<1x32xf32>
    %157 = vector.broadcast %156 : vector<1x32xf32> to vector<8x32xf32>
    %158 = arith.addf %155, %157 : vector<8x32xf32>
    %159 = arith.addf %158, %133 : vector<8x32xf32>
    %c0_71 = arith.constant 0 : index
    %c0_72 = arith.constant 0 : index
    %160 = vector.load %arg16[%c0_71, %c0_72] : memref<1x32xf32, #tpu.memory_space<vmem>>, vector<1x32xf32>
    %c0_73 = arith.constant 0 : index
    %c0_74 = arith.constant 0 : index
    %161 = vector.load %arg17[%c0_73, %c0_74] : memref<1x32xf32, #tpu.memory_space<vmem>>, vector<1x32xf32>
    %cst_75 = arith.constant dense<0.000000e+00> : vector<8xf32>
    %162 = vector.multi_reduction <add>, %159, %cst_75 [1] : vector<8x32xf32> to vector<8xf32>
    %163 = vector.shape_cast %162 : vector<8xf32> to vector<8x1xf32>
    %cst_76 = arith.constant 3.200000e+01 : f32
    %164 = vector.broadcast %cst_76 : f32 to vector<8x1xf32>
    %165 = arith.divf %163, %164 : vector<8x1xf32>
    %166 = vector.broadcast %165 : vector<8x1xf32> to vector<8x32xf32>
    %167 = arith.subf %159, %166 : vector<8x32xf32>
    %168 = arith.mulf %167, %167 : vector<8x32xf32>
    %cst_77 = arith.constant dense<0.000000e+00> : vector<8xf32>
    %169 = vector.multi_reduction <add>, %168, %cst_77 [1] : vector<8x32xf32> to vector<8xf32>
    %170 = vector.shape_cast %169 : vector<8xf32> to vector<8x1xf32>
    %cst_78 = arith.constant 3.200000e+01 : f32
    %171 = vector.broadcast %cst_78 : f32 to vector<8x1xf32>
    %172 = arith.divf %170, %171 : vector<8x1xf32>
    %cst_79 = arith.constant 9.99999996E-13 : f32
    %173 = vector.broadcast %cst_79 : f32 to vector<8x1xf32>
    %174 = arith.addf %172, %173 : vector<8x1xf32>
    %175 = math.rsqrt %174 : vector<8x1xf32>
    %176 = vector.broadcast %175 : vector<8x1xf32> to vector<8x32xf32>
    %177 = arith.mulf %167, %176 : vector<8x32xf32>
    %178 = vector.broadcast %160 : vector<1x32xf32> to vector<8x32xf32>
    %179 = arith.mulf %177, %178 : vector<8x32xf32>
    %180 = vector.broadcast %161 : vector<1x32xf32> to vector<8x32xf32>
    %181 = arith.addf %179, %180 : vector<8x32xf32>
    %182 = arith.truncf %181 : vector<8x32xf32> to vector<8x32xbf16>
    %c0_80 = arith.constant 0 : index
    %c0_81 = arith.constant 0 : index
    %c0_82 = arith.constant 0 : index
    %183 = vector.load %arg18[%c0_80, %c0_81, %c0_82] : memref<1x8x32xbf16, #tpu.memory_space<vmem>>, vector<1x8x32xbf16>
    %184 = vector.shape_cast %183 : vector<1x8x32xbf16> to vector<8x32xbf16>
    %185 = vector.shape_cast %182 : vector<8x32xbf16> to vector<1x8x32xbf16>
    tpu.vector_store %arg18[%c0_80, %c0_81, %c0_82], %185 {strides = array<i32>} : memref<1x8x32xbf16, #tpu.memory_space<vmem>>, vector<1x8x32xbf16>,
    return
  }
  func.func @transform_0(%arg0: i32, %arg1: i32) -> (i32, i32, i32) {
    %c0_i32 = arith.constant 0 : i32
    %c0_i32_0 = arith.constant 0 : i32
    return %arg0, %arg1, %c0_i32 : i32, i32, i32
  }
  func.func @transform_1(%arg0: i32, %arg1: i32) -> (i32, i32, i32) {
    %c0_i32 = arith.constant 0 : i32
    %c0_i32_0 = arith.constant 0 : i32
    %c0_i32_1 = arith.constant 0 : i32
    return %arg0, %c0_i32, %c0_i32_0 : i32, i32, i32
  }
  func.func @transform_2(%arg0: i32, %arg1: i32) -> (i32, i32) {
    %c0_i32 = arith.constant 0 : i32
    %c0_i32_0 = arith.constant 0 : i32
    %c0_i32_1 = arith.constant 0 : i32
    return %c0_i32, %c0_i32_0 : i32, i32
  }
  func.func @transform_3(%arg0: i32, %arg1: i32) -> (i32, i32) {
    %c0_i32 = arith.constant 0 : i32
    %c0_i32_0 = arith.constant 0 : i32
    %c0_i32_1 = arith.constant 0 : i32
    return %c0_i32, %c0_i32_0 : i32, i32
  }
  func.func @transform_4(%arg0: i32, %arg1: i32) -> (i32, i32) {
    %c0_i32 = arith.constant 0 : i32
    %c0_i32_0 = arith.constant 0 : i32
    %c0_i32_1 = arith.constant 0 : i32
    return %c0_i32, %c0_i32_0 : i32, i32
  }
  func.func @transform_5(%arg0: i32, %arg1: i32) -> (i32, i32) {
    %c0_i32 = arith.constant 0 : i32
    %c0_i32_0 = arith.constant 0 : i32
    %c0_i32_1 = arith.constant 0 : i32
    return %c0_i32, %c0_i32_0 : i32, i32
  }
  func.func @transform_6(%arg0: i32, %arg1: i32) -> (i32, i32) {
    %c0_i32 = arith.constant 0 : i32
    %c0_i32_0 = arith.constant 0 : i32
    %c0_i32_1 = arith.constant 0 : i32
    return %c0_i32, %c0_i32_0 : i32, i32
  }
  func.func @transform_7(%arg0: i32, %arg1: i32) -> (i32, i32) {
    %c0_i32 = arith.constant 0 : i32
    %c0_i32_0 = arith.constant 0 : i32
    %c0_i32_1 = arith.constant 0 : i32
    return %c0_i32, %c0_i32_0 : i32, i32
  }
  func.func @transform_8(%arg0: i32, %arg1: i32) -> (i32, i32) {
    %c0_i32 = arith.constant 0 : i32
    %c0_i32_0 = arith.constant 0 : i32
    %c0_i32_1 = arith.constant 0 : i32
    return %c0_i32, %c0_i32_0 : i32, i32
  }
  func.func @transform_9(%arg0: i32, %arg1: i32) -> (i32, i32) {
    %c0_i32 = arith.constant 0 : i32
    %c0_i32_0 = arith.constant 0 : i32
    %c0_i32_1 = arith.constant 0 : i32
    return %c0_i32, %c0_i32_0 : i32, i32
  }
  func.func @transform_10(%arg0: i32, %arg1: i32) -> (i32, i32) {
    %c0_i32 = arith.constant 0 : i32
    %c0_i32_0 = arith.constant 0 : i32
    %c0_i32_1 = arith.constant 0 : i32
    return %c0_i32, %c0_i32_0 : i32, i32
  }
  func.func @transform_11(%arg0: i32, %arg1: i32) -> (i32, i32) {
    %c0_i32 = arith.constant 0 : i32
    %c0_i32_0 = arith.constant 0 : i32
    %c0_i32_1 = arith.constant 0 : i32
    return %c0_i32, %c0_i32_0 : i32, i32
  }
  func.func @transform_12(%arg0: i32, %arg1: i32) -> (i32, i32) {
    %c0_i32 = arith.constant 0 : i32
    %c0_i32_0 = arith.constant 0 : i32
    %c0_i32_1 = arith.constant 0 : i32
    return %c0_i32, %c0_i32_0 : i32, i32
  }
  func.func @transform_13(%arg0: i32, %arg1: i32) -> (i32, i32) {
    %c0_i32 = arith.constant 0 : i32
    %c0_i32_0 = arith.constant 0 : i32
    %c0_i32_1 = arith.constant 0 : i32
    return %c0_i32, %c0_i32_0 : i32, i32
  }
  func.func @transform_14(%arg0: i32, %arg1: i32) -> (i32, i32) {
    %c0_i32 = arith.constant 0 : i32
    %c0_i32_0 = arith.constant 0 : i32
    %c0_i32_1 = arith.constant 0 : i32
    return %c0_i32, %c0_i32_0 : i32, i32
  }
  func.func @transform_15(%arg0: i32, %arg1: i32) -> (i32, i32) {
    %c0_i32 = arith.constant 0 : i32
    %c0_i32_0 = arith.constant 0 : i32
    %c0_i32_1 = arith.constant 0 : i32
    return %c0_i32, %c0_i32_0 : i32, i32
  }
  func.func @transform_16(%arg0: i32, %arg1: i32) -> (i32, i32, i32) {
    %c0_i32 = arith.constant 0 : i32
    %c0_i32_0 = arith.constant 0 : i32
    return %arg0, %arg1, %c0_i32 : i32, i32, i32
  }
}

</mosaic_0001>

<bundles_post_ra>
// kernel: tpu_custom_call.1
= control target key start
LH: loop header
LB: loop body
LE: loop exit
PB: predicated region body
PF: predicated region fallthrough
CT: control target
= control target key end

     0   :  { %s1832_s0 = inlined_call_operand.hbm [shape: bf16[2,8,32], index: 0, kind: input, shape index: {}]   ;;  %s1833_s1 = inlined_call_operand.hbm [shape: bf16[2,8,32], index: 1, kind: input, shape index: {}]   ;;  %s1834_s2 = inlined_call_operand.vmem [shape: f32[1,32], index: 2, kind: input, shape index: {}]   ;;  %s1835_s3 = inlined_call_operand.vmem [shape: f32[1,32], index: 3, kind: input, shape index: {}]   ;;  %s1836_s4 = inlined_call_operand.vmem [shape: bf16[32,96], index: 4, kind: input, shape index: {}]   ;;  %s1837_s5 = inlined_call_operand.vmem [shape: f32[1,96], index: 5, kind: input, shape index: {}]   ;;  %s1838_s6 = inlined_call_operand.vmem [shape: bf16[32,32], index: 6, kind: input, shape index: {}]   ;;  %s1839_s7 = inlined_call_operand.vmem [shape: f32[1,32], index: 7, kind: input, shape index: {}]   ;;  %s1840_s8 = inlined_call_operand.vmem [shape: f32[1,32], index: 8, kind: input, shape index: {}]   ;;  %s1841_s9 = inlined_call_operand.vmem [shape: f32[1,32], index: 9, kind: input, shape index: {}]   ;;  %s1842_s10 = inlined_call_operand.vmem [shape: bf16[32,64], index: 10, kind: input, shape index: {}]   ;;  %s1843_s11 = inlined_call_operand.vmem [shape: f32[1,64], index: 11, kind: input, shape index: {}]   ;;  %s1844_s12 = inlined_call_operand.vmem [shape: bf16[64,32], index: 12, kind: input, shape index: {}]   ;;  %s1845_s13 = inlined_call_operand.vmem [shape: f32[1,32], index: 13, kind: input, shape index: {}]   ;;  %s1846_s14 = inlined_call_operand.vmem [shape: f32[1,32], index: 14, kind: input, shape index: {}]   ;;  %s1847_s15 = inlined_call_operand.vmem [shape: f32[1,32], index: 15, kind: input, shape index: {}]   ;;  %s1848_s16 = inlined_call_operand.hbm [shape: bf16[2,8,32], index: 16, kind: output, shape index: {}]  }
   0x1   :  { %1857 = sst [smem:[#allocation20_spill]] %s1832_s0 }
   0x2   :  { %1858 = sst [smem:[#allocation21_spill]] %s1843_s11 }
   0x3   :  { %1859 = sst [smem:[#allocation22_spill]] %s1845_s13 }
   0x4   :  { %1860 = sst [smem:[#allocation23_spill]] %s1846_s14 }
   0x5   :  { %1861 = sst [smem:[#allocation24_spill]] %s1847_s15 }
   0x6   :  { %1862 = sst [smem:[#allocation25_spill]] %s1848_s16 }
   0x7   :  { %21 = vsyncpa [#allocation4], 0 }
   0x8   :  { %23 = vsyncpa [#allocation4 + $0x1], 0 }
   0x9   :  { %24 = vsyncpa [#allocation7], 0 }
   0xa   :  { %26 = vsyncpa [#allocation7 + $0x1], 0 }
   0xb   :  { %27 = vsyncpa [#allocation5], 0 }
   0xc   :  { %29 = vsyncpa [#allocation5 + $0x1], 0  ;;  %s1597_s21 = smov 0   ;;  %s1599_s22 = smov 0  }
   0xd   :  { %s1601_s23 = smov 0   ;;  %s1603_s24 = smov 0  }
   0xe   :  { %s1605_s25 = smov 0   ;;  %s1607_s26 = smov 0  }
   0xf LB: > { %1863 = sst [smem:[#allocation12_spill]] %s1485_s21  ;;  %s1182_s27 = sadd.s32 4294967295, %s1505_s26   ;;  %s1505_s26 = sphi %s1607_s26, %s35_s26   ;;  %s1501_s25 = sphi %s1605_s25, %s1888_s25   ;;  %s1497_s24 = sphi %s1603_s24, %s1887_s24   ;;  %s1493_s23 = sphi %s1601_s23, %s1886_s23   ;;  %s1489_s22 = sphi %s1599_s22, %s1890_s22   ;;  %s1485_s21 = sphi %s1597_s21, %s1889_s21  }
  0x10   : > { %1864 = sst [smem:[#allocation13_spill]] %s1493_s23  ;;  %s1183_s28 = sadd.s32 4294967294, %s1505_s26  }
  0x11   : > { %1865 = sst [smem:[#allocation14_spill]] %s1497_s24  ;;  %s47_s29 = sadd.s32 1, %s1501_s25 }
  0x12   : > { %1866 = sst [smem:[#allocation15_spill]] %s1501_s25  ;;  %s56_s30 = sadd.s32 1, %s1493_s23 }
  0x13   : > { %p49_p0 = scmp.ge.s32.totalorder %s47_s29, 2  ;;  %p63_p1 = scmp.ne.s32.totalorder %s1493_s23, %s1489_s22 }
  0x14   : > { %p64_p2 = scmp.eq.s32.totalorder %s1505_s26, 0  ;;  %p69_p3 = scmp.ne.s32.totalorder %s1489_s22, %s1485_s21 }
  0x15   : > { %s1892_s29 = smov (%p49_p0, %s47_s29), 0  ;;  %p70_p5 = scmp.eq.s32.totalorder %s1182_s27, 0 }
  0x16   : > { %1867 = sst [smem:[#allocation16_spill]] %s1892_s29  ;;  %p1638_p4 = por %p64_p2, %p63_p1 }
  0x17   : > { %s51_s17 = ssub.s32 %s1501_s25, %s1892_s29  ;;  %p415_p6 = scmp.eq.s32.totalorder %s1182_s27, 1 }
  0x18   : > { %p54_p7 = scmp.eq.s32.totalorder %s51_s17, 0  ;;  %p1644_p8 = por %p70_p5, %p69_p3 }
  0x19   : > { %p1648_p9 = por %p415_p6, %p63_p1  ;;  %p421_p10 = scmp.eq.s32.totalorder %s1183_s28, 1 }
  0x1a   : > { %s1653_s20 = scalar_select %p54_p7, %s1493_s23, %s56_s30  }
  0x1b   : > { %s1870_s19 = scalar_select %p1648_p9, 1, 0 }
  0x1c   : > { %1872 = sst [smem:[#allocation18_spill]] %s1653_s20  ;;  %p1655_p11 = por %p421_p10, %p69_p3 }
  0x1d   : > { %1871 = sst [smem:[#allocation17_spill]] %s1870_s19  ;;  %p1185_p12 = scmp.ge.s32.totalorder %s1505_s26, 2 }
  0x1e   : > { %s1873_s21 = scalar_select %p1655_p11, 1, 0 }
  0x1f   : > { %p1274_p13 = scmp.lt.s32.totalorder %s1505_s26, 2  ;;  %s483_s27 = sand.u32 1, %s1493_s23  }
  0x20   : > { %1874 = sst [smem:[#allocation19_spill]] %s1873_s21  ;;  %s1186_s17 = sshll.u32 %s483_s27, 2 }
  0x21   : > { %s1187_s29 = sshll.u32 %s1501_s25, 2  ;;  %s1875_s14 = sld [smem:[#allocation20_spill]] }
  0x22   : > { %s487_s13 = scalar_lea.vmem [#allocation3], %s1186_s17  ;;  %p1264_p0 = pnand %p1274_p13, %p1638_p4 }
  0x23   : > { %s496_s19 = sshll.u32 %s487_s13, 4  ;;  %p1190_p1 = scmp.ge.s32.totalorder %s1505_s26, 1  ;;  %s497_s19 = int_to_ptr.vmem [resolvable:$true] %s496_s19 }
  0x24   : > { %p520_p2 = scmp.lt.s32.totalorder %s1505_s26, 3  ;;  %s484_s28 = scalar_lea.sflag [#allocation4], %s483_s27 }
  0x25   : > { %s511_s25 = scalar_lea.hbm %s1833_s1, %s1187_s29  ;;  %s507_s23 = scalar_lea.vmem [#allocation6], %s1186_s17 }
  0x26   : > { %p521_p3 = pnand %p1190_p1, %p520_p2  ;;  %s515_s21 = sshll.u32 %s507_s23, 4  ;;  %s516_s21 = int_to_ptr.vmem [resolvable:$true] %s515_s21 }
  0x27   : > { %s492_s24 = scalar_lea.hbm %s1875_s14, %s1187_s29  ;;  %s513_s15 = sshll.u32 %s511_s25, 4  ;;  %s514_s15 = int_to_ptr.hbm [resolvable:$true] %s513_s15 }
  0x28   : > { %s494_s11 = sshll.u32 %s492_s24, 4  ;;  %s504_s13 = scalar_lea.sflag [#allocation7], %s483_s27  ;;  %s495_s11 = int_to_ptr.hbm [resolvable:$true] %s494_s11 }
  0x29   : > { %1266 = dma.hbm_to_vmem [thread:$0]  (!%p1264_p0), %s495_s11, 64, %s497_s19, %s484_s28  }
  0x2a   : > { %1269 = dma.hbm_to_vmem [thread:$0]  (!%p1264_p0), %s514_s15, 64, %s516_s21, %s504_s13  }
  0x2b   : > { %524 = sbr.rel (%p521_p3) target bundleno = 2451 (0x993), region = 84  ;;  %s1674_s14 = sand.u32 (!%p521_p3), 1, %s1489_s22  }
  0x2c   : > { %s1677_s11 = sshll.u32 (!%p521_p3), %s1674_s14, 2  ;;  %s527_s16 = scalar_lea.sflag (!%p521_p3), [#allocation4], %s1674_s14 }
  0x2d   : > { %s530_s24 = scalar_lea.vmem (!%p521_p3), [#allocation3], %s1677_s11 }
  0x30   : > { %1472 = dma.done.wait (%p1644_p8), %s527_s16, 64  }
  0x31   : > { %1474 = vsyncadd (%p1644_p8), %s527_s16, 4294967232  ;;  %s537_s21 = scalar_lea.sflag [#allocation7], %s1674_s14  ;;  %s540_s23 = scalar_lea.vmem [#allocation6], %s1677_s11 }
  0x32   : > { %1476 = dma.done.wait (%p1644_p8), %s537_s21, 64  }
  0x33   : > { %1478 = vsyncadd (%p1644_p8), %s537_s21, 4294967232  ;;  %v598_v0 = vld [vmem:[%s540_s23] sm:$0xf]  ;;  %vm602_vm0 = vcmask 261120   ;;  %v596_v2 = vld [vmem:[%s530_s24] sm:$0xf] }
  0x34   : > { %v599_v1 = vunpack.c.l.bf16 %v598_v0  ;;  %v597_v4 = vunpack.c.l.bf16 %v596_v2  ;;  %v1507_v6 = vmov 32.0   ;;  %v1248_v9 = vld [vmem:[%s1836_s4 + $0x8] sm:$0xff]  ;;  %s1508_s0 = smov 96   ;;  %v1247_v11 = vld [vmem:[%s1836_s4] sm:$0xff]  ;;  %vm729_vm8 = vcmask 130048   ;;  %s1509_s13 = smov 112  }
  0x35   : > { %1339 = vrcp.f32 %v1507_v6  ;;  %704 = vrot.lane.b32.xlu2 %v1248_v9, %s1508_s0  ;;  %695 = vmatpush.bf16.msra.mxu0 %v1248_v9  ;;  %v1331_v30 = vld [vmem:[%s1837_s5] ss:$0 sm:$0xff]  ;;  %vm750_vm9 = vcmask 64512   ;;  %vm771_vm10 = vcmask 1043456   ;;  %s1510_s16 = smov 80   ;;  %s1511_s23 = smov 16  }
  0x36   : > { %v640_v3 = vsel %vm602_vm0, %v599_v1, 0.0  ;;  %v603_v5 = vsel %vm602_vm0, %v597_v4, 0.0  ;;  %v1329_v42 = vld [vmem:[%s1834_s2] ss:$0 sm:$0xff]  ;;  %vm853_vm11 = vcmask 261248   ;;  %s1876_s27 = sld [smem:[#allocation21_spill]] }
  0x37   : > { %641 = vadd.xlane.f32.xlu0 %v640_v3  ;;  %v1330_v45 = vld [vmem:[%s1835_s3] ss:$0 sm:$0xff]  ;;  %vm1009_vm15 = vcmask 523264   ;;  %s1877_s30 = sld [smem:[#allocation22_spill]]  ;;  %s594_s17 = scalar_lea.vmem [#allocation8], %s1677_s11 }
  0x38   : > { %s1878_s15 = sld [smem:[#allocation14_spill]]  ;;  %s1076_s28 = sshll.u32 %s594_s17, 4  ;;  %s1077_s28 = int_to_ptr.vmem [resolvable:$true] %s1076_s28 }
  0x39   : > { %696 = vmatpush.bf16.msra.mxu0 %v1247_v11  ;;  %s1879_s21 = sld [smem:[#allocation23_spill]] }
  0x3a   : > { %s1880_s29 = sld [smem:[#allocation24_spill]] }
  0x3b   : > { %v1340_v7 = vpop.eup %1339  ;;  %s1881_s19 = sld [smem:[#allocation25_spill]] }
  0x3c   : > { %v607_v8 = vmul.f32 32.0, %v1340_v7  ;;  %vm611_vm1 = vweird.f32 %v1340_v7 }
  0x3d   : > { %702 = vrot.lane.b32.xlu2 %v1247_v11, %s1508_s0 }
  0x3e   : > { %v608_v10 = vsub.f32 1.0, %v607_v8 }
  0x3f   : > { %604 = vadd.xlane.f32.xlu0 %v603_v5 }
  0x40   : > { %v609_v12 = vmul.f32 %v1340_v7, %v608_v10 }
  0x41   : > { %s1439_s11 = scalar_lea.hbm %s1881_s19, 8 }
  0x42   : > { %v610_v13 = vadd.f32 %v1340_v7, %v609_v12 }
  0x44   : > { %v1701_v14 = vsel %vm611_vm1, %v1340_v7, %v610_v13 }
  0x53   : > { %708 = vrot.lane.b32.xlu0 %v1331_v30, %s1508_s0 }
  0x8f   : > { %v705_v25 = vpop.permute.xlu2 %704 }
  0x90   : > { %720 = vmatpush.bf16.msra.mxu1 %v705_v25 }
  0x97   : > { %v703_v26 = vpop.permute.xlu2 %702 }
  0x98   : > { %721 = vmatpush.bf16.msra.mxu1 %v703_v26 }
  0xaa   : > { %v642_v15 = vpop.xlane.xlu0 %641 }
  0xab   : > { %v643_v16 = vmul.f32 %v642_v15, %v1701_v14 }
  0xad   : > { %v644_v17 = vsub.f32 %v599_v1, %v643_v16 }
  0xaf   : > { %v645_v18 = vmul.f32 %v644_v17, %v644_v17 }
  0xb1   : > { %v646_v19 = vsel %vm602_vm0, %v645_v18, 0.0 }
  0xb2   : > { %647 = vadd.xlane.f32.xlu1 %v646_v19  ;;  %v605_v20 = vpop.xlane.xlu0 %604 }
  0xb3   : > { %v613_v21 = vmul.f32 %v1701_v14, %v605_v20 }
  0xb5   : > { %v614_v22 = vsub.f32 %v597_v4, %v613_v21 }
  0xb7   : > { %v615_v23 = vmul.f32 %v614_v22, %v614_v22 }
  0xb9   : > { %v616_v24 = vsel %vm602_vm0, %v615_v23, 0.0 }
  0xba   : > { %617 = vadd.xlane.f32.xlu1 %v616_v24 }
  0xc5   : > { %v709_v58 = vpop.permute.xlu0 %708 }
 0x125   : > { %v648_v27 = vpop.xlane.xlu1 %647 }
 0x126   : > { %v649_v28 = vmul.f32 %v648_v27, %v1701_v14 }
 0x128   : > { %v650_v29 = vadd.f32 1e-12, %v649_v28 }
 0x12a   : > { %1341 = vrsqrt.f32 %v650_v29  ;;  %vm657_vm3 = vweird.f32 %v650_v29 }
 0x12d   : > { %v618_v31 = vpop.xlane.xlu1 %617 }
 0x12e   : > { %v619_v32 = vmul.f32 %v618_v31, %v1701_v14 }
 0x130   : > { %v1342_v33 = vpop.eup %1341  ;;  %v620_v34 = vadd.f32 1e-12, %v619_v32 }
 0x131   : > { %v652_v35 = vmul.f32 %v1342_v33, %v650_v29  ;;  %vm658_vm2 = vweird.f32 %v1342_v33 }
 0x132   : > { %1343 = vrsqrt.f32 %v620_v34  ;;  %vm659_vm4 = vmor %vm657_vm3, %vm658_vm2  ;;  %vm627_vm6 = vweird.f32 %v620_v34  ;;  %vm1060_vm3 = vcmask 257024  }
 0x133   : > { %v653_v36 = vmul.f32 %v1342_v33, %v652_v35 }
 0x135   : > { %v654_v37 = vmul.f32 0.5, %v653_v36 }
 0x137   : > { %v655_v38 = vsub.f32 1.5, %v654_v37 }
 0x138   : > { %v1344_v39 = vpop.eup %1343 }
 0x139   : > { %v656_v40 = vmul.f32 %v1342_v33, %v655_v38  ;;  %v622_v41 = vmul.f32 %v1344_v39, %v620_v34  ;;  %vm628_vm5 = vweird.f32 %v1344_v39 }
 0x13a   : > { %vm629_vm7 = vmor %vm627_vm6, %vm628_vm5 }
 0x13b   : > { %v660_v43 = vsel %vm659_vm4, %v1342_v33, %v656_v40  ;;  %v623_v44 = vmul.f32 %v1344_v39, %v622_v41 }
 0x13c   : > { %v661_v46 = vmul.f32 %v660_v43, %v644_v17 }
 0x13d   : > { %v624_v47 = vmul.f32 0.5, %v623_v44  ;;  %v1250_v44 = vld [vmem:[%s1838_s6 + $0x8] sm:$0xff] }
 0x13e   : > { %v662_v48 = vmul.f32 %v1329_v42, %v661_v46  ;;  %886 = vmatpush.bf16.msrb.mxu1 %v1250_v44 }
 0x13f   : > { %v625_v49 = vsub.f32 1.5, %v624_v47  ;;  %v1249_v47 = vld [vmem:[%s1838_s6] sm:$0xff] }
 0x140   : > { %v663_v50 = vadd.f32 %v1330_v45, %v662_v48 }
 0x141   : > { %v626_v51 = vmul.f32 %v1344_v39, %v625_v49 }
 0x142   : > { %v665_v52 = vpack.c.bf16 %v663_v50, %v663_v50  ;;  %887 = vmatpush.bf16.msrb.mxu1 %v1249_v47 }
 0x143   : > { %v630_v53 = vsel %vm629_vm7, %v1344_v39, %v626_v51  ;;  %v1332_v51 = vld [vmem:[%s1839_s7] ss:$0 sm:$0xff] }
 0x144   : > { %v631_v54 = vmul.f32 %v630_v53, %v614_v22  ;;  %1203 = vmatmul.msk.bf16.vlgmr.msra.gmra.mxu1 %vm602_vm0, %v665_v52 }
 0x146   : > { %v635_v55 = vmul.f32 %v1329_v42, %v631_v54 }
 0x148   : > { %v1720_v56 = vadd.f32 %v1330_v45, %v635_v55 }
 0x14a   : > { %v664_v57 = vpack.c.bf16 %v1720_v56, %v1720_v56 }
 0x14c   : > { %1202 = vmatmul.msk.bf16.vlgmr.msra.gmra.mxu0 %vm602_vm0, %v664_v57 }
 0x1c1   : > { %v723_v59 = vpop.f32.mrf.mxu1 }
 0x1c2   : > { %v724_v60 = vadd.f32 %v723_v59, %v709_v58 }
 0x1c4   : > { %v728_v61 = vpack.c.bf16 %v724_v60, %v724_v60 }
 0x1c6   : > { %v764_v62 = vunpack.c.l.b16 %v728_v61  ;;  %v734_v63 = vsel %vm729_vm8, %v728_v61, 0 }
 0x1c7   : > { %743 = vmatpush.bf16.xpose.msra.mxu2 %v734_v63  ;;  %v1252_v63 = vld [vmem:[%s1842_s10 + $0x8] sm:$0xff] }
 0x1c8   : > { %v765_v0 = vpack.c.b16 %v764_v62, %v764_v62 }
 0x1c9   : > { %v698_v1 = vpop.f32.mrf.mxu0  ;;  %v725_v2 = vpop.f32.mrf.mxu1 }
 0x1ca   : > { %v699_v3 = vadd.f32 %v1331_v30, %v698_v1  ;;  %794 = vrot.lane.b32.xlu0 %v765_v0, %s1509_s13 }
 0x1cc   : > { %v727_v4 = vpack.c.bf16 %v699_v3, %v699_v3 }
 0x1ce   : > { %v790_v5 = vunpack.c.l.b16 %v727_v4  ;;  %1204 = vmatmul.msk.bf16.vlgmr.msra.gmra.mxu2 %vm729_vm8, %v727_v4 }
 0x1cf   : > { %956 = vmatpush.bf16.msrb.mxu2 %v1252_v63 }
 0x1d0   : > { %v791_v6 = vpack.c.b16 %v790_v5, %v790_v5 }
 0x1d1   : > { %v700_v7 = vpop.f32.mrf.mxu0 }
 0x1d2   : > { %792 = vrot.lane.b32.xlu0 %v791_v6, %s1509_s13  ;;  %s1244_s13 = sshll.u32 %s1878_s15, 2  ;;  %s1063_s15 = scalar_lea.sflag [#allocation5], %s1674_s14 }
 0x1d3   : > { %s1074_s20 = scalar_lea.hbm %s1881_s19, %s1244_s13 }
 0x23c   : > { %v795_v18 = vpop.permute.xlu0 %794 }
 0x23d   : > { %v800_v21 = vsel %vm729_vm8, %v795_v18, 0  ;;  %v1255_v18 = vld [vmem:[%s1844_s12 + $0x10] sm:$0xff] }
 0x244   : > { %v793_v28 = vpop.permute.xlu0 %792 }
 0x251   : > { %v745_v8 = vpop.f32.mrf.mxu2 }
 0x252   : > { %v749_v9 = vmul.f32 0.25, %v745_v8 }
 0x254   : > { %v751_v10 = vsel %vm750_vm9, %v749_v9, -inf }
 0x255   : > { %752 = vmax.xlane.f32.xlu1 %v751_v10 }
 0x259   : > { %v747_v11 = vpop.f32.mrf.mxu2 }
 0x26e   : > { %766 = vrot.lane.b32.xlu1 %v765_v0, %s1508_s0 }
 0x2c8   : > { %v753_v12 = vpop.xlane.xlu1 %752 }
 0x2c9   : > { %v754_v13 = vsub.f32 %v749_v9, %v753_v12  ;;  %v1333_v9 = vld [vmem:[%s1840_s8] ss:$0 sm:$0xff] }
 0x2ca   : > { %v1334_v12 = vld [vmem:[%s1841_s9] ss:$0 sm:$0xff] }
 0x2cb   : > { %v755_v15 = vmul.f32 1.442695, %v754_v13 }
 0x2cd   : > { %1345 = vpow2.f32 %v755_v15 }
 0x2d3   : > { %v1346_v16 = vpop.eup %1345 }
 0x2d4   : > { %v757_v17 = vsel %vm750_vm9, %v1346_v16, 0.0 }
 0x2d5   : > { %758 = vadd.xlane.f32.xlu2 %v757_v17  ;;  %v1256_v17 = vld [vmem:[%s1844_s12 + $0x18] sm:$0xff] }
 0x2e0   : > { %v767_v19 = vpop.permute.xlu1 %766 }
 0x2e1   : > { %v773_v20 = vsel %vm771_vm10, %v767_v19, 0  ;;  %v1254_v19 = vld [vmem:[%s1844_s12 + $0x8] sm:$0xff] }
 0x2e2   : > { %782 = vmatpush.bf16.msra.mxu3 %v773_v20  ;;  %v1253_v20 = vld [vmem:[%s1844_s12] sm:$0xff] }
 0x2e6   : > { %809 = vmatpush.bf16.xpose.msrb.mxu3 %v800_v21  ;;  %v1335_v21 = vld [vmem:[%s1876_s27] ss:$0 sm:$0xff] }
 0x2ed   : > { %828 = vrot.lane.b32.xlu2 %v765_v0, %s1510_s16 }
 0x348   : > { %v759_v22 = vpop.xlane.xlu2 %758 }
 0x349   : > { %1347 = vrcp.f32 %v759_v22 }
 0x34f   : > { %v1348_v23 = vpop.eup %1347 }
 0x350   : > { %v829_v24 = vpop.permute.xlu2 %828  ;;  %v761_v25 = vmul.f32 %v1348_v23, %v1346_v16 }
 0x351   : > { %v834_v26 = vsel %vm771_vm10, %v829_v24, 0 }
 0x352   : > { %843 = vmatpush.bf16.msrb.mxu0 %v834_v26  ;;  %v762_v27 = vpack.c.bf16 %v761_v25, %v761_v25 }
 0x354   : > { %1205 = vmatmul.msk.bf16.vlgmr.msra.gmra.mxu3 %vm750_vm9, %v762_v27 }
 0x355   : > { %1017 = vmatpush.bf16.msra.mxu3 %v1256_v17 }
 0x359   : > { %1018 = vmatpush.bf16.msra.mxu3 %v1255_v18 }
 0x35d   : > { %1019 = vmatpush.bf16.msra.mxu3 %v1254_v19 }
 0x361   : > { %1020 = vmatpush.bf16.msra.mxu3 %v1253_v20 }
 0x364   : > { %1206 = vmatmul.msk.bf16.vlgmr.msrb.gmra.mxu3 %vm729_vm8, %v793_v28 }
 0x3d7   : > { %v784_v29 = vpop.f32.mrf.mxu3 }
 0x3d8   : > { %788 = vst.msk [vmem:[#allocation2] sm:$0xff] %vm729_vm8, %v784_v29 }
 0x3df   : > { %v786_v30 = vpop.f32.mrf.mxu3 }
 0x3e7   : > { %v811_v31 = vpop.f32.mrf.mxu3 }
 0x3e8   : > { %v815_v32 = vmul.f32 0.25, %v811_v31 }
 0x3ea   : > { %v816_v33 = vsel %vm750_vm9, %v815_v32, -inf }
 0x3eb   : > { %817 = vmax.xlane.f32.xlu1 %v816_v33 }
 0x3ef   : > { %v813_v34 = vpop.f32.mrf.mxu3 }
 0x45e   : > { %v818_v35 = vpop.xlane.xlu1 %817 }
 0x45f   : > { %v819_v36 = vsub.f32 %v815_v32, %v818_v35  ;;  %v1336_v35 = vld [vmem:[%s1877_s30] ss:$0 sm:$0xff]  ;;  %s1078_s30 = sshll.u32 %s1074_s20, 4  ;;  %s1079_s30 = int_to_ptr.hbm [resolvable:$true] %s1078_s30 }
 0x460   : > { %s1433_s16 = sshra.s32 %s1079_s30, 4  ;;  %s1434_s16 = int_to_ptr.hbm [resolvable:$true] %s1433_s16 }
 0x461   : > { %v820_v37 = vmul.f32 1.442695, %v819_v36  ;;  %s1435_s24 = scalar_lea.hbm %s1434_s16, 4  ;;  %p1440_p7 = scmp.lt.s32.totalorder %s1434_s16, %s1881_s19 }
 0x462   : > { %p1436_p4 = scmp.ne.s32.totalorder %s1434_s16, %s1435_s24  ;;  %p1441_p8 = scmp.lt.s32.totalorder %s1439_s11, %s1435_s24 }
 0x463   : > { %1349 = vpow2.f32 %v820_v37 }
 0x464   : > { %p1437_p5 = pnand %p1436_p4, %p1648_p9  ;;  %p1442_p10 = por %p1441_p8, %p1440_p7 }
 0x466   : > { %p1438_p6 = pneg %p1437_p5 }
 0x468   : > { %p1443_p13 = pnand %p1442_p10, %p1438_p6 }
 0x469   : > { %v1350_v38 = vpop.eup %1349 }
 0x46a   : > { %v822_v39 = vsel %vm750_vm9, %v1350_v38, 0.0 }
 0x46b   : > { %823 = vadd.xlane.f32.xlu0 %v822_v39 }
 0x4de   : > { %v824_v40 = vpop.xlane.xlu0 %823 }
 0x4df   : > { %1351 = vrcp.f32 %v824_v40 }
 0x4e5   : > { %v1352_v41 = vpop.eup %1351 }
 0x4e6   : > { %v826_v42 = vmul.f32 %v1352_v41, %v1350_v38 }
 0x4e8   : > { %v827_v43 = vpack.c.bf16 %v826_v42, %v826_v42 }
 0x4ea   : > { %1207 = vmatmul.msk.bf16.vlgmr.msrb.gmra.mxu0 %vm750_vm9, %v827_v43 }
 0x567   : > { %v845_v45 = vpop.f32.mrf.mxu0 }
 0x568   : > { %850 = vrot.lane.b32.xlu2 %v845_v45, %s1511_s23 }
 0x56f   : > { %v847_v46 = vpop.f32.mrf.mxu0 }
 0x5c2   : > { %v851_v48 = vpop.permute.xlu2 %850 }
 0x5c3   : > { %854 = vst.msk [vmem:[#allocation2] sm:$0xff] %vm853_vm11, %v851_v48 }
 0x5ca   : > { %v855_v49 = vld [vmem:[#allocation2] sm:$0xff] }
 0x5cb   : > { %v856_v50 = vpack.c.bf16 %v855_v49, %v855_v49 }
 0x5cd   : > { %1216 = vmatmul.msk.bf16.vlgmr.msrb.gmra.mxu1 %vm602_vm0, %v856_v50 }
 0x64a   : > { %v889_v52 = vpop.f32.mrf.mxu1 }
 0x64b   : > { %v890_v53 = vadd.f32 %v1332_v51, %v889_v52 }
 0x64d   : > { %v893_v54 = vadd.f32 %v890_v53, %v1720_v56  ;;  %v1251_v56 = vld [vmem:[%s1842_s10] sm:$0xff] }
 0x64e   : > { %957 = vmatpush.bf16.msrb.mxu2 %v1251_v56 }
 0x64f   : > { %v896_v55 = vsel %vm602_vm0, %v893_v54, 0.0 }
 0x650   : > { %897 = vadd.xlane.f32.xlu2 %v896_v55  ;;  %v1337_v55 = vld [vmem:[%s1879_s21] ss:$0 sm:$0xff] }
 0x652   : > { %v891_v57 = vpop.f32.mrf.mxu1 }
 0x6c3   : > { %v898_v58 = vpop.xlane.xlu2 %897 }
 0x6c4   : > { %v899_v59 = vmul.f32 %v898_v58, %v1701_v14 }
 0x6c6   : > { %v900_v60 = vsub.f32 %v893_v54, %v899_v59 }
 0x6c8   : > { %v901_v61 = vmul.f32 %v900_v60, %v900_v60 }
 0x6ca   : > { %v902_v62 = vsel %vm602_vm0, %v901_v61, 0.0 }
 0x6cb   : > { %903 = vadd.xlane.f32.xlu1 %v902_v62 }
 0x73e   : > { %v904_v0 = vpop.xlane.xlu1 %903 }
 0x73f   : > { %v905_v1 = vmul.f32 %v904_v0, %v1701_v14 }
 0x741   : > { %v906_v2 = vadd.f32 1e-12, %v905_v1 }
 0x743   : > { %1353 = vrsqrt.f32 %v906_v2  ;;  %vm913_vm13 = vweird.f32 %v906_v2 }
 0x749   : > { %v1354_v3 = vpop.eup %1353 }
 0x74a   : > { %v908_v4 = vmul.f32 %v1354_v3, %v906_v2  ;;  %vm914_vm12 = vweird.f32 %v1354_v3 }
 0x74b   : > { %vm915_vm14 = vmor %vm913_vm13, %vm914_vm12 }
 0x74c   : > { %v909_v5 = vmul.f32 %v1354_v3, %v908_v4 }
 0x74e   : > { %v910_v6 = vmul.f32 0.5, %v909_v5 }
 0x750   : > { %v911_v7 = vsub.f32 1.5, %v910_v6 }
 0x752   : > { %v912_v8 = vmul.f32 %v1354_v3, %v911_v7 }
 0x754   : > { %v916_v10 = vsel %vm915_vm14, %v1354_v3, %v912_v8 }
 0x755   : > { %v917_v11 = vmul.f32 %v916_v10, %v900_v60 }
 0x757   : > { %v921_v13 = vmul.f32 %v1333_v9, %v917_v11 }
 0x759   : > { %v925_v15 = vadd.f32 %v1334_v12, %v921_v13 }
 0x75b   : > { %v926_v16 = vpack.c.bf16 %v925_v15, %v925_v15 }
 0x75d   : > { %1225 = vmatmul.msk.bf16.vlgmr.msrb.gmra.mxu2 %vm602_vm0, %v926_v16 }
 0x7e0   : > { %v959_v22 = vpop.f32.mrf.mxu2 }
 0x7e1   : > { %v960_v23 = vadd.f32 %v1335_v21, %v959_v22 }
 0x7e3   : > { %v964_v24 = vmul.f32 0.044715, %v960_v23  ;;  %v963_v31 = vmul.f32 0.5, %v960_v23 }
 0x7e5   : > { %v965_v25 = vmul.f32 %v964_v24, %v960_v23 }
 0x7e7   : > { %v966_v26 = vmul.f32 %v965_v25, %v960_v23 }
 0x7e8   : > { %v961_v27 = vpop.f32.mrf.mxu2 }
 0x7e9   : > { %v967_v28 = vadd.f32 %v966_v26, %v960_v23 }
 0x7eb   : > { %v968_v29 = vmul.f32 0.7978846, %v967_v28 }
 0x7ed   : > { %1355 = vtanh.f32 %v968_v29 }
 0x7f3   : > { %v1356_v30 = vpop.eup %1355 }
 0x7f4   : > { %v970_v32 = vadd.f32 1.0, %v1356_v30 }
 0x7f6   : > { %v971_v33 = vmul.f32 %v970_v32, %v963_v31 }
 0x7f8   : > { %v972_v34 = vpack.c.bf16 %v971_v33, %v971_v33 }
 0x7fa   : > { %1242 = vmatmul.msk.bf16.vlgmr.msra.gmra.mxu3 %vm1009_vm15, %v972_v34 }
 0x87d   : > { %v1022_v36 = vpop.f32.mrf.mxu3 }
 0x87e   : > { %v1023_v37 = vadd.f32 %v1336_v35, %v1022_v36 }
 0x880   : > { %v1026_v38 = vadd.f32 %v1023_v37, %v925_v15 }
 0x882   : > { %v1029_v39 = vsel %vm602_vm0, %v1026_v38, 0.0 }
 0x883   : > { %1030 = vadd.xlane.f32.xlu0 %v1029_v39 }
 0x885   : > { %v1024_v40 = vpop.f32.mrf.mxu3 }
 0x8f6   : > { %v1031_v41 = vpop.xlane.xlu0 %1030 }
 0x8f7   : > { %v1032_v42 = vmul.f32 %v1031_v41, %v1701_v14 }
 0x8f9   : > { %v1033_v43 = vsub.f32 %v1026_v38, %v1032_v42 }
 0x8fb   : > { %v1034_v44 = vmul.f32 %v1033_v43, %v1033_v43 }
 0x8fd   : > { %v1035_v45 = vsel %vm602_vm0, %v1034_v44, 0.0 }
 0x8fe   : > { %1036 = vadd.xlane.f32.xlu1 %v1035_v45 }
 0x971   : > { %v1037_v46 = vpop.xlane.xlu1 %1036 }
 0x972   : > { %v1038_v47 = vmul.f32 %v1037_v46, %v1701_v14  ;;  %v1338_v14 = vld [vmem:[%s1880_s29] ss:$0 sm:$0xff] }
 0x974   : > { %v1039_v48 = vadd.f32 1e-12, %v1038_v47 }
 0x976   : > { %1357 = vrsqrt.f32 %v1039_v48  ;;  %vm1046_vm2 = vweird.f32 %v1039_v48 }
 0x97c   : > { %v1358_v49 = vpop.eup %1357 }
 0x97d   : > { %v1041_v50 = vmul.f32 %v1358_v49, %v1039_v48  ;;  %vm1047_vm1 = vweird.f32 %v1358_v49 }
 0x97e   : > { %vm1048_vm0 = vmor %vm1046_vm2, %vm1047_vm1 }
 0x97f   : > { %v1042_v51 = vmul.f32 %v1358_v49, %v1041_v50 }
 0x981   : > { %v1043_v52 = vmul.f32 0.5, %v1042_v51 }
 0x983   : > { %v1044_v53 = vsub.f32 1.5, %v1043_v52 }
 0x985   : > { %v1045_v54 = vmul.f32 %v1358_v49, %v1044_v53 }
 0x987   : > { %v1049_v57 = vsel %vm1048_vm0, %v1358_v49, %v1045_v54 }
 0x988   : > { %v1050_v58 = vmul.f32 %v1049_v57, %v1033_v43 }
 0x98a   : > { %v1054_v59 = vmul.f32 %v1337_v55, %v1050_v58 }
 0x98c   : > { %v1058_v60 = vadd.f32 %v1338_v14, %v1054_v59 }
 0x98e   : > { %v1059_v61 = vpack.c.bf16 %v1058_v60, %v1058_v60 }
 0x990   : > { %1061 = vst.msk [vmem:[%s594_s17] sm:$0xf] %vm1060_vm3, %v1059_v61 }
 0x991   : > { %1446 = shalt.err (!%p1443_p13)
}
 0x992   : > { %1261 = dma.vmem_to_hbm [thread:$0]  (%p1648_p9), %s1077_s28, 64, %s1079_s30, %s1063_s15  }
 0x993 PF: > { %s1883_s14 = sld [smem:[#allocation12_spill]]  ;;  %p1271_p0 = pnand %p1185_p12, %p1655_p11 }
 0x995   : > { %p1272_p1 = pneg %p1271_p0 }
 0x999   : > { %s1090_s0 = sand.u32 1, %s1883_s14  }
 0x99a   : > { %s1091_s18 = scalar_lea.sflag [#allocation5], %s1090_s0 }
 0x99b   : > { %1480 = dma.done.wait (%p1272_p1), %s1091_s18, 64  }
 0x99c   : > { %1482 = vsyncadd (%p1272_p1), %s1091_s18, 4294967232  ;;  %s35_s26 = sadd.s32 1, %s1505_s26   ;;  %s1885_s20 = sld [smem:[#allocation13_spill]] }
 0x99d   : > { %p32_p2 = scmp.ge.s32.totalorder %s35_s26, 4   ;;  %s1886_s23 = sld [smem:[#allocation18_spill]] }
 0x99e   : > { %s1887_s24 = sld [smem:[#allocation15_spill]]  ;;  %s1889_s21 = smov %s1489_s22 }
 0x99f   : > { %s1888_s25 = sld [smem:[#allocation16_spill]]  ;;  %34 = sbr.rel (!%p32_p2) target bundleno = 15 (0xf), region = 142 }
 0x9a2   : > { %s1890_s22 = smov %s1885_s20 }
 0x9a4   :  { %1097 = vsyncpa [#allocation4], 1 }
 0x9a5   :  { %1099 = vsyncpa [#allocation4 + $0x1], 1 }
 0x9a6   :  { %1100 = vsyncpa [#allocation7], 1 }
 0x9a7   :  { %1102 = vsyncpa [#allocation7 + $0x1], 1 }
 0x9a8   :  { %1103 = vsyncpa [#allocation5], 1 }
 0x9a9   :  { %1105 = vsyncpa [#allocation5 + $0x1], 1 }

</bundles_post_ra>
